<compile_context>
chip_gen: v6e
topology: v6e:2x2x1
jax: 0.10.0
libtpu: 0.0.40
codegen_flags: <defaults>
</compile_context>

<pallas_src>
import functools

import numpy as np
import jax
import jax.numpy as jnp
from jax.experimental import pallas as pl
from jax.experimental.pallas import tpu as pltpu

LN_EPS = 1e-5
_LANE = 128
_SUBLANE = 8


def _round_up(n, m):
    return -(-n // m) * m


# ---------------------------------------------------------------------------
# Generation-aware VMEM budget
# ---------------------------------------------------------------------------
@functools.lru_cache(maxsize=None)
def _vmem_budget_bytes():
    """~80% of this chip's VMEM (headroom for compiler scratch); 64 MiB fallback (v7x)."""
    try:
        cap = int(pltpu.get_tpu_info().vmem_capacity_bytes)
    except Exception:  # noqa: BLE001 - query unavailable -> be conservative
        cap = 64 << 20
    return max(16 << 20, int(cap * 0.8))


# ---------------------------------------------------------------------------
# Single-buffering of grid-invariant operands (pl.Buffered(1)), probed once
# ---------------------------------------------------------------------------
@functools.lru_cache(maxsize=None)
def _single_buffer_supported():
    """Check end-to-end that pipeline_mode=pl.Buffered(1) compiles, runs and is correct."""
    try:
        def _probe(c_ref, x_ref, o_ref):
            o_ref[...] = x_ref[...] + c_ref[...]

        c = jnp.ones((_SUBLANE, _LANE), jnp.float32)
        x = jnp.ones((2 * _SUBLANE, _LANE), jnp.float32)
        out = pl.pallas_call(
            _probe,
            out_shape=jax.ShapeDtypeStruct((2 * _SUBLANE, _LANE), jnp.float32),
            grid=(2,),
            in_specs=[
                pl.BlockSpec((_SUBLANE, _LANE), lambda i: (0, 0),
                             pipeline_mode=pl.Buffered(1)),
                pl.BlockSpec((_SUBLANE, _LANE), lambda i: (i, 0)),
            ],
            out_specs=pl.BlockSpec((_SUBLANE, _LANE), lambda i: (i, 0)),
        )(c, x)
        out = jax.block_until_ready(out)
        return bool(jnp.all(out == 2.0))
    except Exception:  # noqa: BLE001 - any failure -> default (double) buffering
        return False


def _invariant_spec(block_shape, index_map):
    """BlockSpec for a grid-invariant operand; single-buffered when supported."""
    if _single_buffer_supported():
        return pl.BlockSpec(block_shape, index_map, pipeline_mode=pl.Buffered(1))
    return pl.BlockSpec(block_shape, index_map)


# ---------------------------------------------------------------------------
# Kernel: o = x @ W_mod + b   (modulation already folded into W_mod)
# ---------------------------------------------------------------------------
def _modlin_kernel(x_ref, w_ref, b_ref, o_ref):
    acc = jnp.dot(x_ref[...], w_ref[...], preferred_element_type=jnp.float32)
    o_ref[...] = (acc + b_ref[...]).astype(o_ref.dtype)


# ---------------------------------------------------------------------------
# One-time parameter preprocessing (hoisted out of the per-call path)
# ---------------------------------------------------------------------------
def prepare_modlin_params(code_vec, W_mat, b_vec, wc_weight, wc_bias, ln_gamma, ln_beta,
                          *, compute_dtype=jnp.bfloat16):
    """Fold LayerNorm(Linear(code_vec)) into W.T, pad N to a lane multiple, cast."""
    size_out, size_in = W_mat.shape

    lin = (code_vec.astype(jnp.float32) @ wc_weight.T.astype(jnp.float32)
           + wc_bias.astype(jnp.float32))
    mean = jnp.mean(lin, axis=-1, keepdims=True)
    var = jnp.mean((lin - mean) ** 2, axis=-1, keepdims=True)
    tc = (lin - mean) * jax.lax.rsqrt(var + LN_EPS) * ln_gamma + ln_beta        # (size_in,)

    # (tc * x) @ W.T  ==  x @ (tc[:, None] * W.T)  -> fold modulation into the weight.
    w_mod = W_mat.T.astype(jnp.float32) * tc.reshape(size_in, 1)                # (K, N)
    b2 = b_vec.reshape(1, size_out).astype(jnp.float32)

    size_out_p = _round_up(size_out, _LANE)          # lane-dense output stores
    if size_out_p != size_out:
        w_mod = jnp.pad(w_mod, ((0, 0), (0, size_out_p - size_out)))
        b2 = jnp.pad(b2, ((0, 0), (0, size_out_p - size_out)))

    return dict(
        w_mod=w_mod.astype(compute_dtype),
        bias=b2,                                     # f32: added after the f32 accumulate
        size_in=size_in,
        size_out=size_out,
        size_out_p=size_out_p,
        compute_dtype=compute_dtype,
    )


# ---------------------------------------------------------------------------
# Per-call forward using prepared params
# ---------------------------------------------------------------------------
def modlin_apply(x, params, *, tm=None, tn=None):
    size_in = params["size_in"]
    size_out = params["size_out"]
    size_out_p = params["size_out_p"]
    w_mod = params["w_mod"]
    bias = params["bias"]
    compute_dtype = params["compute_dtype"]

    lead = x.shape[:-1]
    out_dtype = x.dtype
    x2 = x.reshape(-1, size_in)
    M = x2.shape[0]

    # Tiny problems: fixed pallas_call / DMA setup dominates and K<128 leaves vregs
    # mostly empty -> plain XLA matmul (fusable with neighbours).
    if size_in < _LANE or size_out < _LANE or M < _SUBLANE:
        prec = (jax.lax.Precision.HIGHEST
                if np.dtype(compute_dtype) == np.dtype(np.float32) else None)
        out = jnp.dot(x2.astype(compute_dtype), w_mod,
                      precision=prec, preferred_element_type=jnp.float32) + bias
        return out[:, :size_out].astype(out_dtype).reshape(*lead, size_out)

    x2 = x2.astype(compute_dtype)          # bf16 by default: faster MXU, half the DMA bytes
    in_item = np.dtype(compute_dtype).itemsize
    out_item = np.dtype(out_dtype).itemsize
    budget = _vmem_budget_bytes()

    # --- N tiling: keep the (K, tn) weight tile within ~1/3 of the VMEM budget
    # (counted double-buffered to stay conservative) -> valid for big weights on v7x. ---
    if tn is None:
        tn = size_out_p
        if 2 * size_in * tn * in_item > budget // 3:
            tn = max(_LANE, ((budget // 3) // (2 * size_in * in_item)) // _LANE * _LANE)
            tn = min(tn, size_out_p)
    n_steps = pl.cdiv(size_out_p, tn)

    # --- M tiling: as large as the remaining budget allows (cap 1024 rows); for M > 128
    # force >= 2 row tiles so both v7x TensorCores get work ("parallel" row axis). ---
    if tm is None:
        if M <= _LANE:
            tm = _round_up(M, _SUBLANE)
        else:
            w_tile = 2 * size_in * tn * in_item
            row_bytes = 2 * (size_in * in_item + tn * out_item)   # dbl-buffered x + out rows
            avail = max(budget - w_tile - (4 << 20), row_bytes * _LANE)
            tm = min(1024, max(_LANE, (avail // row_bytes) // _LANE * _LANE))
            tm = min(tm, _round_up(pl.cdiv(M, 2), _LANE))
    m_steps = pl.cdiv(M, tm)       # ragged last tile handled by Pallas (no jnp.pad copy)

    vmem_need = (2 * tm * size_in * in_item        # x tiles (double buffered)
                 + 2 * tm * tn * out_item          # out tiles
                 + 2 * size_in * tn * in_item      # weight tile(s) (conservative x2)
                 + 2 * tn * 4)                     # bias
    vmem_limit = int(min(budget, max(vmem_need + (4 << 20), 32 << 20)))

    w_map = lambda i, j: (0, j)
    b_map = lambda i, j: (0, j)
    if n_steps == 1:
        # Weight & bias are grid-invariant: single-buffer them (double buffering buys
        # nothing for a constant index_map, and the weight is the largest allocation).
        w_spec = _invariant_spec((size_in, tn), w_map)
        b_spec = _invariant_spec((1, tn), b_map)
    else:
        w_spec = pl.BlockSpec((size_in, tn), w_map)
        b_spec = pl.BlockSpec((1, tn), b_map)

    out = pl.pallas_call(
        _modlin_kernel,
        out_shape=jax.ShapeDtypeStruct((M, size_out_p), out_dtype),
        grid_spec=pltpu.PrefetchScalarGridSpec(
            num_scalar_prefetch=0,
            grid=(m_steps, n_steps),                 # N innermost: x tile stays resident
            in_specs=[
                pl.BlockSpec((tm, size_in), lambda i, j: (i, 0)),   # x row tile
                w_spec,                                             # modulated W^T tile
                b_spec,                                             # bias tile
            ],
            out_specs=pl.BlockSpec((tm, tn), lambda i, j: (i, j)),
        ),
        compiler_params=pltpu.CompilerParams(
            dimension_semantics=("parallel", "arbitrary"),
            vmem_limit_bytes=vmem_limit,
        ),
    )(x2, w_mod, bias)

    if size_out_p != size_out:
        out = out[:, :size_out]
    return out.reshape(*lead, size_out)


def modlin_forward(x, code_vec, W_mat, b_vec, wc_weight, wc_bias, ln_gamma, ln_beta,
                   *, compute_dtype=jnp.bfloat16, tm=None, tn=None):
    """Convenience wrapper: prepare params (normally done once) then apply."""
    params = prepare_modlin_params(code_vec, W_mat, b_vec, wc_weight, wc_bias,
                                   ln_gamma, ln_beta, compute_dtype=compute_dtype)
    return modlin_apply(x, params, tm=tm, tn=tn)


# ---------------------------------------------------------------------------
# Pure-JAX reference (matches the PyTorch ModLin.forward semantics)
# ---------------------------------------------------------------------------
def modlin_reference(x, code_vec, W_mat, b_vec, wc_weight, wc_bias, ln_gamma, ln_beta):
    lin = code_vec @ wc_weight.T + wc_bias
    mean = jnp.mean(lin, axis=-1, keepdims=True)
    var = jnp.mean((lin - mean) ** 2, axis=-1, keepdims=True)
    tc = (lin - mean) / jnp.sqrt(var + LN_EPS) * ln_gamma + ln_beta
    return jnp.dot(tc * x, W_mat.T, precision=jax.lax.Precision.HIGHEST) + b_vec


# ---------------------------------------------------------------------------
# Tests
# ---------------------------------------------------------------------------
def _run_case(key, *, batch, seq, hid_dim, code_size, compute_dtype, atol, rtol, tn=None):
    k1, k2, k3, k4, k5, k6 = jax.random.split(key, 6)
    x = jax.random.normal(k1, (batch, seq, hid_dim), dtype=jnp.float32)
    code_vec = jax.random.normal(k2, (code_size,), dtype=jnp.float32)
    # DiniFuncRow uses a square W (hid_dim, hid_dim) shared by all ModLins.
    W_mat = jax.random.normal(k3, (hid_dim, hid_dim), dtype=jnp.float32) * 0.1
    b_vec = jax.random.normal(k4, (hid_dim,), dtype=jnp.float32) * 0.1
    wc_weight = jax.random.normal(k5, (hid_dim, code_size), dtype=jnp.float32) * 0.1
    wc_bias = jax.random.normal(k6, (hid_dim,), dtype=jnp.float32) * 0.1
    ln_gamma = jnp.ones((hid_dim,), dtype=jnp.float32)
    ln_beta = jnp.zeros((hid_dim,), dtype=jnp.float32)

    params = prepare_modlin_params(code_vec, W_mat, b_vec, wc_weight, wc_bias,
                                   ln_gamma, ln_beta, compute_dtype=compute_dtype)
    out = modlin_apply(x, params, tn=tn)
    out = jax.block_until_ready(out)
    ref = modlin_reference(x, code_vec, W_mat, b_vec, wc_weight, wc_bias, ln_gamma, ln_beta)
    assert out.shape == (batch, seq, hid_dim), out.shape
    assert out.dtype == x.dtype, out.dtype
    err = float(jnp.max(jnp.abs(out - ref)))
    assert jnp.allclose(out, ref, atol=atol, rtol=rtol), f"mismatch vs reference: {err}"


if __name__ == "__main__":
    key = jax.random.PRNGKey(0)
    k1, k2, k3, k4, k5 = jax.random.split(key, 5)

    # 1) Tiny (hid_dim=32, K<128 lanes): routed to the fused XLA path, fp32, tight tol.
    _run_case(k1, batch=2, seq=8, hid_dim=32, code_size=16,
              compute_dtype=jnp.float32, atol=1e-3, rtol=1e-3)

    # 2) Pallas path, fp32: M=512 -> two 256-row tiles (feeds both v7x TCs),
    #    single N tile -> grid-invariant weight single-buffered when supported.
    _run_case(k2, batch=2, seq=256, hid_dim=128, code_size=16,
              compute_dtype=jnp.float32, atol=1e-3, rtol=1e-3)

    # 3) Pallas path, default bf16 matmul inputs (f32 accumulate), looser tolerance.
    _run_case(k3, batch=2, seq=256, hid_dim=128, code_size=16,
              compute_dtype=jnp.bfloat16, atol=3e-2, rtol=2e-2)

    # 4) Ragged M (no jnp.pad copy of x): 200 rows -> 128-row tiles, partial last block.
    _run_case(k4, batch=1, seq=200, hid_dim=128, code_size=16,
              compute_dtype=jnp.float32, atol=1e-3, rtol=1e-3)

    # 5) N-tiled weight path (forced small tn to exercise the multi-N-step grid).
    _run_case(k5, batch=2, seq=64, hid_dim=256, code_size=16,
              compute_dtype=jnp.float32, atol=1e-3, rtol=1e-3, tn=128)

    print("KERNEL_OK")
</pallas_src>

<mosaic_0001>
module attributes {stable_mosaic.version = 11 : i64} {
  func.func @_probe(%arg0: i32, %arg1: memref<8x128xf32, #tpu.memory_space<vmem>>, %arg2: memref<8x128xf32, #tpu.memory_space<vmem>>, %arg3: memref<8x128xf32, #tpu.memory_space<vmem>>) attributes {dimension_semantics = [#tpu.dimension_semantics<arbitrary>], iteration_bounds = array<i64: 2>, scalar_prefetch = 0 : i64, scratch_operands = 0 : i64, tpu.core_type = #tpu.core_type<tc>, window_params = [{pipeline_mode = #tpu.pipeline_mode<synchronous>, transform_indices = @transform_0, window_bounds = array<i64: 8, 128>}, {transform_indices = @transform_1, window_bounds = array<i64: 8, 128>}, {transform_indices = @transform_2, window_bounds = array<i64: 8, 128>}]} {
    %c0 = arith.constant 0 : index
    %c0_0 = arith.constant 0 : index
    %0 = vector.load %arg2[%c0, %c0_0] : memref<8x128xf32, #tpu.memory_space<vmem>>, vector<8x128xf32>
    %c0_1 = arith.constant 0 : index
    %c0_2 = arith.constant 0 : index
    %1 = vector.load %arg1[%c0_1, %c0_2] : memref<8x128xf32, #tpu.memory_space<vmem>>, vector<8x128xf32>
    %2 = arith.addf %0, %1 : vector<8x128xf32>
    %c0_3 = arith.constant 0 : index
    %c0_4 = arith.constant 0 : index
    %3 = vector.load %arg3[%c0_3, %c0_4] : memref<8x128xf32, #tpu.memory_space<vmem>>, vector<8x128xf32>
    tpu.vector_store %arg3[%c0_3, %c0_4], %2 {strides = array<i32>} : memref<8x128xf32, #tpu.memory_space<vmem>>, vector<8x128xf32>,
    return
  }
  func.func @transform_0(%arg0: i32) -> (i32, i32) {
    %c0_i32 = arith.constant 0 : i32
    %c0_i32_0 = arith.constant 0 : i32
    %c0_i32_1 = arith.constant 0 : i32
    return %c0_i32, %c0_i32_0 : i32, i32
  }
  func.func @transform_1(%arg0: i32) -> (i32, i32) {
    %c0_i32 = arith.constant 0 : i32
    %c0_i32_0 = arith.constant 0 : i32
    return %arg0, %c0_i32 : i32, i32
  }
  func.func @transform_2(%arg0: i32) -> (i32, i32) {
    %c0_i32 = arith.constant 0 : i32
    %c0_i32_0 = arith.constant 0 : i32
    return %arg0, %c0_i32 : i32, i32
  }
}

module attributes {stable_mosaic.version = 11 : i64} {
  func.func @_modlin_kernel(%arg0: i32, %arg1: i32, %arg2: memref<256x128xf32, #tpu.memory_space<vmem>>, %arg3: memref<128x128xf32, #tpu.memory_space<vmem>>, %arg4: memref<1x128xf32, #tpu.memory_space<vmem>>, %arg5: memref<256x128xf32, #tpu.memory_space<vmem>>) attributes {dimension_semantics = [#tpu.dimension_semantics<parallel>, #tpu.dimension_semantics<arbitrary>], iteration_bounds = array<i64: 2, 1>, scalar_prefetch = 0 : i64, scratch_operands = 0 : i64, tpu.core_type = #tpu.core_type<tc>, window_params = [{transform_indices = @transform_0, window_bounds = array<i64: 256, 128>}, {transform_indices = @transform_1, window_bounds = array<i64: 128, 128>}, {transform_indices = @transform_2, window_bounds = array<i64: 1, 128>}, {transform_indices = @transform_3, window_bounds = array<i64: 256, 128>}]} {
    %c0 = arith.constant 0 : index
    %c0_0 = arith.constant 0 : index
    %0 = vector.load %arg2[%c0, %c0_0] : memref<256x128xf32, #tpu.memory_space<vmem>>, vector<256x128xf32>
    %c0_1 = arith.constant 0 : index
    %c0_2 = arith.constant 0 : index
    %1 = vector.load %arg3[%c0_1, %c0_2] : memref<128x128xf32, #tpu.memory_space<vmem>>, vector<128x128xf32>
    %cst = arith.constant dense<0.000000e+00> : vector<256x128xf32>
    %2 = tpu.matmul %0, %1, %cst {dimension_numbers = #tpu.dot_dimension_numbers<[1], [0], [0], [1], [0, 0, 1, 1], [], []>} : vector<256x128xf32>, vector<128x128xf32>, vector<256x128xf32> -> vector<256x128xf32>
    %c0_3 = arith.constant 0 : index
    %c0_4 = arith.constant 0 : index
    %3 = vector.load %arg4[%c0_3, %c0_4] : memref<1x128xf32, #tpu.memory_space<vmem>>, vector<1x128xf32>
    %4 = vector.broadcast %3 : vector<1x128xf32> to vector<256x128xf32>
    %5 = arith.addf %2, %4 : vector<256x128xf32>
    %c0_5 = arith.constant 0 : index
    %c0_6 = arith.constant 0 : index
    %6 = vector.load %arg5[%c0_5, %c0_6] : memref<256x128xf32, #tpu.memory_space<vmem>>, vector<256x128xf32>
    tpu.vector_store %arg5[%c0_5, %c0_6], %5 {strides = array<i32>} : memref<256x128xf32, #tpu.memory_space<vmem>>, vector<256x128xf32>,
    return
  }
  func.func @transform_0(%arg0: i32, %arg1: i32) -> (i32, i32) {
    %c0_i32 = arith.constant 0 : i32
    %c0_i32_0 = arith.constant 0 : i32
    return %arg0, %c0_i32 : i32, i32
  }
  func.func @transform_1(%arg0: i32, %arg1: i32) -> (i32, i32) {
    %c0_i32 = arith.constant 0 : i32
    %c0_i32_0 = arith.constant 0 : i32
    return %c0_i32, %arg1 : i32, i32
  }
  func.func @transform_2(%arg0: i32, %arg1: i32) -> (i32, i32) {
    %c0_i32 = arith.constant 0 : i32
    %c0_i32_0 = arith.constant 0 : i32
    return %c0_i32, %arg1 : i32, i32
  }
  func.func @transform_3(%arg0: i32, %arg1: i32) -> (i32, i32) {
    %c0_i32 = arith.constant 0 : i32
    return %arg0, %arg1 : i32, i32
  }
}

</mosaic_0001>

<bundles_post_ra>
// kernel: tpu_custom_call.1
= control target key start
LH: loop header
LB: loop body
LE: loop exit
PB: predicated region body
PF: predicated region fallthrough
CT: control target
= control target key end

     0   :  { %7 = vsyncpa [#allocation3], 0  ;;  %s651_s0 = inlined_call_operand.hbm [shape: f32[8,128], index: 0, kind: input, shape index: {}]   ;;  %s652_s1 = inlined_call_operand.hbm [shape: f32[16,128], index: 1, kind: input, shape index: {}]   ;;  %s653_s2 = inlined_call_operand.hbm [shape: f32[16,128], index: 2, kind: output, shape index: {}]  }
   0x1   :  { %8 = vsyncpa [#allocation6], 0 }
   0x2   :  { %10 = vsyncpa [#allocation6 + $0x1], 0 }
   0x3   :  { %11 = vsyncpa [#allocation4], 0 }
   0x4   :  { %13 = vsyncpa [#allocation4 + $0x1], 0  ;;  %s485_s9 = smov 0   ;;  %s487_s10 = smov 0  }
   0x5   :  { %s489_s11 = smov 0   ;;  %s491_s12 = smov 0  }
   0x6 LB: > { %s506_s13 = sadd.s32 4294967295, %s465_s12   ;;  %s272_s14 = sadd.s32 4294967294, %s465_s12   ;;  %s465_s12 = sphi %s491_s12, %s676_s12   ;;  %s461_s11 = sphi %s489_s11, %s675_s11   ;;  %s457_s10 = sphi %s487_s10, %s674_s10   ;;  %s453_s9 = sphi %s485_s9, %s673_s9  }
   0x7   : > { %p60_p0 = scmp.ne.s32.totalorder %s457_s10, %s453_s9  ;;  %p654_p1 = scmp.eq.s32.totalorder %s506_s13, 0 }
   0x8   : > { %p90_p3 = scmp.eq.s32.totalorder %s272_s14, 1  ;;  %p273_p5 = scmp.ge.s32.totalorder %s465_s12, 1 }
   0x9   : > { %p515_p4 = por %p654_p1, %p60_p0  ;;  %p97_p7 = scmp.lt.s32.totalorder %s465_s12, 3 }
   0xa   : > { %p520_p6 = por %p90_p3, %p60_p0  ;;  %s467_s18 = smov [#allocation2]  }
   0xb   : > { %s658_s15 = scalar_select %p515_p4, 1, 0 }
   0xc   : > { %s659_s16 = scalar_select %p520_p6, 1, 0 }
   0xd   : > { %p525_p8 = pnand %p273_p5, %p97_p7  ;;  %s110_s19 = sshll.u32 %s467_s18, 4  ;;  %s111_s19 = int_to_ptr.vmem [resolvable:$true] %s110_s19 }
   0xe   : > { %s533_s20 = sadd.s32 1, %s465_s12   ;;  %s47_s24 = sadd.s32 1, %s461_s11 }
   0xf   : > { %s660_s17 = scalar_select %p525_p8, 1, 0 }
  0x10   : > { %p294_p10 = pneg %p525_p8  ;;  %s44_s22 = ssub.s32 %s465_s12, %s533_s20 }
  0x11   : > { %p543_p12 = scmp.eq.s32.totalorder %s44_s22, 0  ;;  %p54_p13 = scmp.ne.s32.totalorder %s461_s11, %s457_s10 }
  0x12   : > { %p537_p11 = pnand %p294_p10, %p654_p1  ;;  %s354_s25 = scalar_lea.vmem %s111_s19, 128 }
  0x13   : > { %p355_p3 = scmp.ne.s32.totalorder %s111_s19, %s354_s25  ;;  %p362_p9 = scmp.lt.s32.totalorder %s111_s19, %s111_s19 }
  0x14   : > { %p345_p0 = pneg %p537_p11  ;;  %p363_p2 = scmp.lt.s32.totalorder %s354_s25, %s354_s25 }
  0x16   : > { %p357_p5 = pnand %p355_p3, %p345_p0  ;;  %p364_p10 = por %p363_p2, %p362_p9 }
  0x18   : > { %p358_p7 = pneg %p357_p5 }
  0x1a   : > { %p365_p1 = pnand %p364_p10, %p358_p7 }
  0x1c   : > { %368 = shalt.err (!%p365_p1)
}
  0x1d   : > { %297 = dma.hbm_to_vmem [thread:$0]  (!%p537_p11), %s651_s0, 128, %s111_s19, [#allocation3]  }
  0x1e   : > { %s560_s28 = scalar_select %p543_p12, %s461_s11, %s47_s24  }
  0x1f   : > { %p55_p1 = scmp.eq.s32.totalorder %s465_s12, 0  ;;  %p663_p2 = scmp.eq.s32.totalorder %s506_s13, 1 }
  0x20   : > { %p307_p0 = scmp.lt.s32.totalorder %s465_s12, 2  ;;  %s121_s30 = sand.u32 1, %s461_s11  }
  0x21   : > { %p568_p9 = por %p663_p2, %p54_p13  ;;  %p56_p3 = por %p55_p1, %p54_p13 }
  0x22   : > { %s276_s3 = sshll.u32 %s121_s30, 3  ;;  %s277_s4 = sshll.u32 %s465_s12, 7 }
  0x23   : > { %s664_s29 = scalar_select %p568_p9, 1, 0 }
  0x24   : > { %s581_s7 = scalar_lea.hbm %s652_s1, %s277_s4  ;;  %s125_s8 = scalar_lea.vmem [#allocation5], %s276_s3 }
  0x25   : > { %s132_s14 = sshll.u32 %s125_s8, 4  ;;  %p583_p11 = pnand %p307_p0, %p56_p3  ;;  %s133_s14 = int_to_ptr.vmem [resolvable:$true] %s132_s14 }
  0x26   : > { %s122_s19 = scalar_lea.sflag [#allocation6], %s121_s30  ;;  %s369_s21 = scalar_lea.hbm %s581_s7, 128 }
  0x27   : > { %p370_p12 = scmp.ne.s32.totalorder %s581_s7, %s369_s21  ;;  %p371_p13 = pneg %p583_p11 }
  0x28   : > { %s374_s24 = scalar_lea.hbm %s652_s1, 256  ;;  %p375_p10 = scmp.lt.s32.totalorder %s581_s7, %s652_s1 }
  0x29   : > { %p372_p5 = pnand %p371_p13, %p370_p12  ;;  %p376_p1 = scmp.lt.s32.totalorder %s374_s24, %s369_s21 }
  0x2b   : > { %p373_p7 = pneg %p372_p5  ;;  %p377_p2 = por %p376_p1, %p375_p10 }
  0x2d   : > { %p378_p0 = pnand %p377_p2, %p373_p7 }
  0x2f   : > { %381 = shalt.err (!%p378_p0)
}
  0x30   : > { %s382_s27 = scalar_lea.vmem %s133_s14, 128  ;;  %s468_s30 = smov [#allocation5]  }
  0x31   : > { %p383_p3 = scmp.ne.s32.totalorder %s133_s14, %s382_s27  ;;  %s387_s3 = sshll.u32 %s468_s30, 4  ;;  %s388_s3 = int_to_ptr.vmem [resolvable:$false] %s387_s3 }
  0x32   : > { %s389_s4 = scalar_lea.vmem %s388_s3, 256  ;;  %p390_p12 = scmp.lt.s32.totalorder %s133_s14, %s388_s3 }
  0x33   : > { %p385_p6 = pnand %p383_p3, %p371_p13  ;;  %p391_p5 = scmp.lt.s32.totalorder %s389_s4, %s382_s27 }
  0x35   : > { %p386_p9 = pneg %p385_p6  ;;  %p392_p4 = por %p391_p5, %p390_p12 }
  0x37   : > { %p393_p8 = pnand %p392_p4, %p386_p9 }
  0x39   : > { %396 = shalt.err (!%p393_p8)
}
  0x3a   : > { %301 = dma.hbm_to_vmem [thread:$0]  (!%p583_p11), %s581_s7, 128, %s133_s14, %s122_s19  }
  0x3b   : > { %p666_p7 = scmp.ne.s32.totalorder %s660_s17, 0 }
  0x3c   : > { %p667_p10 = scmp.eq.s32.totalorder (!%p666_p7), %s506_s13, 0 }
  0x3d   : > { %141 = sbr.rel (%p666_p7) target bundleno = 96 (0x60), region = 28 }
  0x42   : > { %440 = dma.done.wait (%p667_p10), [#allocation3], 128   ;;  %p668_p6 = pmov %p667_p10 }
  0x43   : > { %s608_s5 = sand.u32 1, %s457_s10   ;;  %p669_p4 = scmp.ne.s32.totalorder %s658_s15, 0 }
  0x44   : > { %442 = vsyncadd (%p668_p6), [#allocation3], 4294967168  ;;  %s280_s6 = sshll.u32 %s608_s5, 3  ;;  %s148_s8 = scalar_lea.sflag [#allocation6], %s608_s5 }
  0x45   : > { %s151_s18 = scalar_lea.vmem [#allocation5], %s280_s6 }
  0x46   : > { %444 = dma.done.wait (%p669_p4), %s148_s8, 128  }
  0x47   : > { %446 = vsyncadd (%p669_p4), %s148_s8, 4294967168  ;;  %s171_s17 = scalar_lea.vmem [#allocation7], %s280_s6  ;;  %s283_s14 = sshll.u32 %s506_s13, 7  ;;  %v172_v0 = vld [vmem:[%s151_s18] sm:$0xff]  ;;  %v173_v1 = vld [vmem:[#allocation2] sm:$0xff] }
  0x48   : > { %s190_s7 = sshll.u32 %s171_s17, 4  ;;  %v174_v2 = vadd.f32 %v173_v1, %v172_v0  ;;  %s188_s22 = scalar_lea.hbm %s653_s2, %s283_s14  ;;  %s191_s7 = int_to_ptr.vmem [resolvable:$true] %s190_s7 }
  0x49   : > { %s177_s23 = scalar_lea.sflag [#allocation4], %s608_s5  ;;  %s397_s24 = scalar_lea.vmem %s191_s7, 128 }
  0x4a   : > { %175 = vst [vmem:[%s171_s17] sm:$0xff] %v174_v2  ;;  %p398_p8 = scmp.ne.s32.totalorder %s191_s7, %s397_s24  ;;  %p670_p9 = scmp.ne.s32.totalorder %s664_s29, 0 }
  0x4b   : > { %s469_s15 = smov [#allocation7]  }
  0x4c   : > { %p399_p11 = pnand %p398_p8, %p670_p9  ;;  %s401_s25 = sshll.u32 %s469_s15, 4  ;;  %s402_s25 = int_to_ptr.vmem [resolvable:$false] %s401_s25 }
  0x4d   : > { %s403_s26 = scalar_lea.vmem %s402_s25, 256  ;;  %p404_p1 = scmp.lt.s32.totalorder %s191_s7, %s402_s25 }
  0x4e   : > { %p400_p13 = pneg %p399_p11  ;;  %p405_p2 = scmp.lt.s32.totalorder %s403_s26, %s397_s24 }
  0x50   : > { %p406_p0 = por %p405_p2, %p404_p1 }
  0x52   : > { %p407_p3 = pnand %p406_p0, %p400_p13 }
  0x54   : > { %410 = shalt.err (!%p407_p3)
}
  0x55   : > { %s411_s13 = scalar_lea.hbm %s188_s22, 128  ;;  %s415_s3 = scalar_lea.hbm %s653_s2, 256 }
  0x56   : > { %p412_p12 = scmp.ne.s32.totalorder %s188_s22, %s411_s13  ;;  %p416_p10 = scmp.lt.s32.totalorder %s188_s22, %s653_s2 }
  0x57   : > { %p417_p6 = scmp.lt.s32.totalorder %s415_s3, %s411_s13 }
  0x58   : > { %p413_p5 = pnand %p412_p12, %p670_p9 }
  0x59   : > { %p418_p4 = por %p417_p6, %p416_p10 }
  0x5a   : > { %p414_p7 = pneg %p413_p5 }
  0x5c   : > { %p419_p8 = pnand %p418_p4, %p414_p7 }
  0x5e   : > { %422 = shalt.err (!%p419_p8)
}
  0x5f   : > { %292 = dma.vmem_to_hbm [thread:$0]  (%p670_p9), %s191_s7, 128, %s188_s22, %s177_s23  }
  0x60 PF: > { %s202_s6 = sand.u32 1, %s453_s9   ;;  %p671_p11 = scmp.ne.s32.totalorder %s659_s16, 0 }
  0x61   : > { %p672_p13 = scmp.ge.s32.totalorder %s465_s12, 2  ;;  %s203_s8 = scalar_lea.sflag [#allocation4], %s202_s6 }
  0x63   : > { %p303_p1 = pnand %p672_p13, %p671_p11 }
  0x65   : > { %p304_p2 = pneg %p303_p1 }
  0x67   : > { %448 = dma.done.wait (%p304_p2), %s203_s8, 128  }
  0x68   : > { %450 = vsyncadd (%p304_p2), %s203_s8, 4294967168  ;;  %p16_p0 = scmp.ge.s32.totalorder %s533_s20, 4   ;;  %s673_s9 = smov %s457_s10 }
  0x69   : > { %s674_s10 = smov %s461_s11  ;;  %s675_s11 = smov %s560_s28 }
  0x6a   : > { %s676_s12 = smov %s533_s20  ;;  %18 = sbr.rel (!%p16_p0) target bundleno = 6 (0x6), region = 78 }
  0x6f   :  { %208 = vsyncpa [#allocation3], 1 }
  0x70   :  { %210 = vsyncpa [#allocation3 + $0x1], 1 }
  0x71   :  { %211 = vsyncpa [#allocation6], 1 }
  0x72   :  { %213 = vsyncpa [#allocation6 + $0x1], 1 }
  0x73   :  { %214 = vsyncpa [#allocation4], 1 }
  0x74   :  { %216 = vsyncpa [#allocation4 + $0x1], 1 }

// kernel: tpu_custom_call.1
= control target key start
LH: loop header
LB: loop body
LE: loop exit
PB: predicated region body
PF: predicated region fallthrough
CT: control target
= control target key end

     0   :  { %8 = vsyncpa [#allocation3], 0  ;;  %s1397_s0 = inlined_call_operand.hbm [shape: f32[512,128], index: 0, kind: input, shape index: {}]   ;;  %s1398_s1 = inlined_call_operand.hbm [shape: f32[128,128], index: 1, kind: input, shape index: {}]   ;;  %s1399_s2 = inlined_call_operand.vmem [shape: f32[1,128], index: 2, kind: input, shape index: {}]   ;;  %s1400_s3 = inlined_call_operand.hbm [shape: f32[512,128], index: 3, kind: output, shape index: {}]  }
   0x1   :  { %10 = vsyncpa [#allocation3 + $0x1], 0 }
   0x2   :  { %11 = vsyncpa [#allocation6], 0 }
   0x3   :  { %12 = vsyncpa [#allocation4], 0 }
   0x4   :  { %14 = vsyncpa [#allocation4 + $0x1], 0  ;;  %s1100_s12 = smov 0   ;;  %s1102_s13 = smov 0  }
   0x5   :  { %s1104_s14 = smov 0   ;;  %s1106_s15 = smov 0  }
   0x6   :  { %s1108_s16 = smov 0   ;;  %s1110_s17 = smov 0  }
   0x7 LB: > { %s675_s18 = sadd.s32 4294967295, %s1071_s17   ;;  %s676_s19 = sadd.s32 4294967294, %s1071_s17   ;;  %s1071_s17 = sphi %s1110_s17, %s20_s17   ;;  %s1067_s16 = sphi %s1108_s16, %s1422_s16   ;;  %s1063_s15 = sphi %s1106_s15, %s1421_s15   ;;  %s1059_s14 = sphi %s1104_s14, %s1420_s14   ;;  %s1055_s13 = sphi %s1102_s13, %s1419_s13   ;;  %s1051_s12 = sphi %s1100_s12, %s1418_s12  }
   0x8   : > { %p52_p0 = scmp.ne.s32.totalorder %s1055_s13, %s1051_s12  ;;  %p1134_p1 = scmp.eq.s32.totalorder %s675_s18, 0 }
   0x9   : > { %p1138_p2 = scmp.eq.s32.totalorder %s675_s18, 1  ;;  %p136_p3 = scmp.eq.s32.totalorder %s676_s19, 1 }
   0xa   : > { %p1144_p4 = por %p1134_p1, %p52_p0  ;;  %p677_p5 = scmp.ge.s32.totalorder %s1071_s17, 1 }
   0xb   : > { %p1149_p6 = por %p136_p3, %p52_p0  ;;  %p143_p7 = scmp.lt.s32.totalorder %s1071_s17, 3 }
   0xc   : > { %s1406_s22 = scalar_select %p1144_p4, 1, 0 }
   0xd   : > { %s1407_s23 = scalar_select %p1149_p6, 1, 0 }
   0xe   : > { %p1154_p8 = pnand %p677_p5, %p143_p7  ;;  %s1073_s25 = smov [#allocation5]  }
   0xf   : > { %s157_s26 = sshll.u32 %s1073_s25, 4  ;;  %s32_s28 = sadd.s32 1, %s1067_s16  ;;  %s158_s26 = int_to_ptr.vmem [resolvable:$true] %s157_s26 }
  0x10   : > { %p864_p9 = pneg %p1154_p8  ;;  %s944_s29 = scalar_lea.vmem %s158_s26, 2048 }
  0x11   : > { %p945_p13 = scmp.ne.s32.totalorder %s158_s26, %s944_s29  ;;  %p952_p5 = scmp.lt.s32.totalorder %s158_s26, %s158_s26 }
  0x12   : > { %p1163_p11 = pnand %p864_p9, %p1134_p1  ;;  %p953_p7 = scmp.lt.s32.totalorder %s944_s29, %s944_s29 }
  0x14   : > { %p935_p12 = pneg %p1163_p11  ;;  %p954_p6 = por %p953_p7, %p952_p5 }
  0x16   : > { %p947_p0 = pnand %p945_p13, %p935_p12 }
  0x18   : > { %p948_p3 = pneg %p947_p0 }
  0x1a   : > { %p955_p4 = pnand %p954_p6, %p948_p3 }
  0x1c   : > { %958 = shalt.err (!%p955_p4)
}
  0x1d   : > { %s1402_s30 = smov 128   ;;  %s1403_s4 = smov 8  }
  0x1e   : > { %867 = dma.hbm_to_vmem [thread:$0]  (!%p1163_p11), %s1398_s1, 2048, %s158_s26, [#allocation6], %s1402_s30, %s1402_s30, %s1403_s4  }
  0x1f   : > { %p34_p4 = scmp.ge.s32.totalorder %s32_s28, 2  ;;  %s39_s7 = sadd.s32 1, %s1059_s14 }
  0x20   : > { %p46_p6 = scmp.ne.s32.totalorder %s1059_s14, %s1055_s13  ;;  %p47_p9 = scmp.eq.s32.totalorder %s1071_s17, 0 }
  0x21   : > { %s1424_s28 = smov (%p34_p4, %s32_s28), 0  ;;  %p877_p0 = scmp.lt.s32.totalorder %s1071_s17, 2 }
  0x22   : > { %p1184_p12 = por %p47_p9, %p46_p6  ;;  %p1190_p13 = por %p1138_p2, %p46_p6 }
  0x23   : > { %s36_s10 = ssub.s32 %s1067_s16, %s1424_s28  ;;  %s177_s11 = sand.u32 1, %s1059_s14  }
  0x24   : > { %p37_p11 = scmp.eq.s32.totalorder %s36_s10, 0  ;;  %s681_s18 = sshll.u32 %s177_s11, 8 }
  0x25   : > { %s694_s25 = sshll.u32 %s1067_s16, 12  ;;  %s181_s5 = scalar_lea.vmem [#allocation2], %s681_s18 }
  0x26   : > { %s1199_s19 = scalar_select %p37_p11, %s1059_s14, %s39_s7  }
  0x27   : > { %s187_s29 = scalar_lea.hbm %s1397_s0, %s694_s25  ;;  %s188_s6 = sshll.u32 %s181_s5, 4  ;;  %s189_s6 = int_to_ptr.vmem [resolvable:$true] %s188_s6 }
  0x28   : > { %p1207_p2 = pnand %p877_p0, %p1184_p12  ;;  %s178_s30 = scalar_lea.sflag [#allocation3], %s177_s11 }
  0x29   : > { %s972_s10 = scalar_lea.vmem %s189_s6, 4096  ;;  %s1076_s7 = smov [#allocation2]  }
  0x2a   : > { %p961_p3 = pneg %p1207_p2  ;;  %p973_p5 = scmp.ne.s32.totalorder %s189_s6, %s972_s10 }
  0x2b   : > { %s977_s4 = sshll.u32 %s1076_s7, 4  ;;  %s978_s4 = int_to_ptr.vmem [resolvable:$false] %s977_s4 }
  0x2c   : > { %p975_p7 = pnand %p973_p5, %p961_p3  ;;  %s979_s25 = scalar_lea.vmem %s978_s4, 8192 }
  0x2d   : > { %p980_p6 = scmp.lt.s32.totalorder %s189_s6, %s978_s4  ;;  %p981_p9 = scmp.lt.s32.totalorder %s979_s25, %s972_s10 }
  0x2e   : > { %p976_p4 = pneg %p975_p7 }
  0x2f   : > { %p982_p11 = por %p981_p9, %p980_p6 }
  0x31   : > { %p983_p10 = pnand %p982_p11, %p976_p4 }
  0x33   : > { %986 = shalt.err (!%p983_p10)
}
  0x34   : > { %s1413_s8 = smov 8   ;;  %s1414_s18 = smov 128  }
  0x35   : > { %871 = dma.hbm_to_vmem [thread:$0]  (!%p1207_p2), %s187_s29, 4096, %s189_s6, %s178_s30, %s1414_s18, %s1414_s18, %s1413_s8  }
  0x36   : > { %200 = sbr.rel (%p1154_p8) target bundleno = 335 (0x14f), region = 32  ;;  %s1221_s11 = sand.u32 (!%p1154_p8), 1, %s1055_s13  }
  0x37   : > { %s685_s4 = sshll.u32 (!%p1154_p8), %s1221_s11, 8  ;;  %s203_s26 = scalar_lea.sflag (!%p1154_p8), [#allocation3], %s1221_s11 }
  0x38   : > { %s1227_s27 = scalar_lea.vmem (!%p1154_p8), [#allocation2], %s685_s4  ;;  %p1415_p10 = scmp.ne.s32.totalorder (!%p1154_p8), %s1406_s22, 0 }
  0x3b   : > { %1038 = dma.done.wait (%p1415_p10), %s203_s26, 4096  }
  0x3c   : > { %1040 = vsyncadd (%p1415_p10), %s203_s26, 4294963200 }
  0x3d   : > { %1042 = dma.done.wait (%p1134_p1), [#allocation6], 2048  }
  0x3e   : > { %1044 = vsyncadd (%p1134_p1), [#allocation6], 4294965248  ;;  %v288_v0 = vld [vmem:[#allocation5 + $0x78] sm:$0xff]  ;;  %v287_v1 = vld [vmem:[#allocation5 + $0x70] sm:$0xff]  ;;  %s1278_s24 = scalar_lea.vmem [#allocation7], %s685_s4  ;;  %s695_s30 = sshll.u32 %s1063_s15, 12 }
  0x3f   : > { %744 = vmatprep.subr.mxu0 %v288_v0  ;;  %824 = vmatprep.subr.mxu1 %v288_v0  ;;  %v286_v2 = vld [vmem:[#allocation5 + $0x68] sm:$0xff]  ;;  %v285_v3 = vld [vmem:[#allocation5 + $0x60] sm:$0xff]  ;;  %v284_v4 = vld [vmem:[#allocation5 + $0x58] sm:$0xff]  ;;  %s568_s29 = sshll.u32 %s1278_s24, 4  ;;  %s1341_s21 = scalar_lea.hbm %s1400_s3, %s695_s30  ;;  %s1343_s29 = int_to_ptr.vmem [resolvable:$true] %s568_s29 }
  0x40   : > { %745 = vmatpush3.msra.mxu0 %v288_v0  ;;  %840 = vmatpush3.msra.mxu1 %v288_v0  ;;  %v283_v5 = vld [vmem:[#allocation5 + $0x50] sm:$0xff]  ;;  %v282_v6 = vld [vmem:[#allocation5 + $0x48] sm:$0xff]  ;;  %v281_v7 = vld [vmem:[#allocation5 + $0x40] sm:$0xff]  ;;  %s554_s15 = scalar_lea.sflag [#allocation4], %s1221_s11  ;;  %s987_s10 = scalar_lea.vmem %s1343_s29, 4096 }
  0x41   : > { %746 = vmatprep.subr.mxu0 %v287_v1  ;;  %825 = vmatprep.subr.mxu1 %v287_v1  ;;  %v280_v8 = vld [vmem:[#allocation5 + $0x38] sm:$0xff]  ;;  %v279_v9 = vld [vmem:[#allocation5 + $0x30] sm:$0xff]  ;;  %v278_v10 = vld [vmem:[#allocation5 + $0x28] sm:$0xff]  ;;  %p988_p1 = scmp.ne.s32.totalorder %s1343_s29, %s987_s10  ;;  %s1077_s7 = smov [#allocation7]  }
  0x42   : > { %747 = vmatpush3.msra.mxu0 %v287_v1  ;;  %841 = vmatpush3.msra.mxu1 %v287_v1  ;;  %v277_v11 = vld [vmem:[#allocation5 + $0x20] sm:$0xff]  ;;  %v276_v12 = vld [vmem:[#allocation5 + $0x18] sm:$0xff]  ;;  %v275_v13 = vld [vmem:[#allocation5 + $0x10] sm:$0xff]  ;;  %s991_s25 = sshll.u32 %s1077_s7, 4  ;;  %s992_s25 = int_to_ptr.vmem [resolvable:$false] %s991_s25 }
  0x43   : > { %748 = vmatprep.subr.mxu0 %v286_v2  ;;  %826 = vmatprep.subr.mxu1 %v286_v2  ;;  %v274_v14 = vld [vmem:[#allocation5 + $0x8] sm:$0xff]  ;;  %v273_v15 = vld [vmem:[#allocation5] sm:$0xff]  ;;  %v243_v20 = vld [vmem:[%s1227_s27 + $0x10] sm:$0xff]  ;;  %p989_p8 = pnand %p988_p1, %p1190_p13  ;;  %s993_s8 = scalar_lea.vmem %s992_s25, 8192 }
  0x44   : > { %749 = vmatpush3.msra.mxu0 %v286_v2  ;;  %842 = vmatpush3.msra.mxu1 %v286_v2  ;;  %v241_v16 = vld [vmem:[%s1227_s27] sm:$0xff]  ;;  %v242_v18 = vld [vmem:[%s1227_s27 + $0x8] sm:$0xff]  ;;  %v259_v21 = vld [vmem:[%s1227_s27 + $0x90] sm:$0xff]  ;;  %p994_p0 = scmp.lt.s32.totalorder %s1343_s29, %s992_s25  ;;  %p995_p2 = scmp.lt.s32.totalorder %s993_s8, %s987_s10 }
  0x45   : > { %750 = vmatprep.subr.mxu0 %v285_v3  ;;  %827 = vmatprep.subr.mxu1 %v285_v3  ;;  %v257_v17 = vld [vmem:[%s1227_s27 + $0x80] sm:$0xff]  ;;  %v258_v19 = vld [vmem:[%s1227_s27 + $0x88] sm:$0xff]  ;;  %v244_v22 = vld [vmem:[%s1227_s27 + $0x18] sm:$0xff]  ;;  %p990_p12 = pneg %p989_p8 }
  0x46   : > { %751 = vmatpush3.msra.mxu0 %v285_v3  ;;  %843 = vmatpush3.msra.mxu1 %v285_v3  ;;  %v260_v23 = vld [vmem:[%s1227_s27 + $0x98] sm:$0xff]  ;;  %v245_v24 = vld [vmem:[%s1227_s27 + $0x20] sm:$0xff]  ;;  %v246_v26 = vld [vmem:[%s1227_s27 + $0x28] sm:$0xff]  ;;  %p996_p3 = por %p995_p2, %p994_p0 }
  0x47   : > { %752 = vmatprep.subr.mxu0 %v284_v4  ;;  %828 = vmatprep.subr.mxu1 %v284_v4  ;;  %v261_v25 = vld [vmem:[%s1227_s27 + $0xa0] sm:$0xff]  ;;  %v262_v27 = vld [vmem:[%s1227_s27 + $0xa8] sm:$0xff]  ;;  %v247_v28 = vld [vmem:[%s1227_s27 + $0x30] sm:$0xff] }
  0x48   : > { %753 = vmatpush3.msra.mxu0 %v284_v4  ;;  %844 = vmatpush3.msra.mxu1 %v284_v4  ;;  %v263_v29 = vld [vmem:[%s1227_s27 + $0xb0] sm:$0xff]  ;;  %v248_v30 = vld [vmem:[%s1227_s27 + $0x38] sm:$0xff]  ;;  %v249_v32 = vld [vmem:[%s1227_s27 + $0x40] sm:$0xff]  ;;  %p997_p5 = pnand %p996_p3, %p990_p12 }
  0x49   : > { %754 = vmatprep.subr.mxu0 %v283_v5  ;;  %829 = vmatprep.subr.mxu1 %v283_v5  ;;  %v264_v31 = vld [vmem:[%s1227_s27 + $0xb8] sm:$0xff]  ;;  %v265_v33 = vld [vmem:[%s1227_s27 + $0xc0] sm:$0xff]  ;;  %v250_v34 = vld [vmem:[%s1227_s27 + $0x48] sm:$0xff] }
  0x4a   : > { %755 = vmatpush3.msra.mxu0 %v283_v5  ;;  %845 = vmatpush3.msra.mxu1 %v283_v5  ;;  %v266_v35 = vld [vmem:[%s1227_s27 + $0xc8] sm:$0xff]  ;;  %v251_v36 = vld [vmem:[%s1227_s27 + $0x50] sm:$0xff]  ;;  %v252_v38 = vld [vmem:[%s1227_s27 + $0x58] sm:$0xff] }
  0x4b   : > { %756 = vmatprep.subr.mxu0 %v282_v6  ;;  %830 = vmatprep.subr.mxu1 %v282_v6  ;;  %v267_v37 = vld [vmem:[%s1227_s27 + $0xd0] sm:$0xff]  ;;  %v268_v39 = vld [vmem:[%s1227_s27 + $0xd8] sm:$0xff]  ;;  %v253_v40 = vld [vmem:[%s1227_s27 + $0x60] sm:$0xff] }
  0x4c   : > { %757 = vmatpush3.msra.mxu0 %v282_v6  ;;  %846 = vmatpush3.msra.mxu1 %v282_v6  ;;  %v269_v41 = vld [vmem:[%s1227_s27 + $0xe0] sm:$0xff]  ;;  %v254_v42 = vld [vmem:[%s1227_s27 + $0x68] sm:$0xff]  ;;  %v255_v44 = vld [vmem:[%s1227_s27 + $0x70] sm:$0xff] }
  0x4d   : > { %758 = vmatprep.subr.mxu0 %v281_v7  ;;  %831 = vmatprep.subr.mxu1 %v281_v7  ;;  %v270_v43 = vld [vmem:[%s1227_s27 + $0xe8] sm:$0xff]  ;;  %v271_v45 = vld [vmem:[%s1227_s27 + $0xf0] sm:$0xff]  ;;  %v256_v46 = vld [vmem:[%s1227_s27 + $0x78] sm:$0xff] }
  0x4e   : > { %759 = vmatpush3.msra.mxu0 %v281_v7  ;;  %847 = vmatpush3.msra.mxu1 %v281_v7  ;;  %v272_v47 = vld [vmem:[%s1227_s27 + $0xf8] sm:$0xff]  ;;  %v1272_v48 = vld [vmem:[%s1399_s2] ss:$0 sm:$0xff] }
  0x4f   : > { %760 = vmatprep.subr.mxu0 %v280_v8  ;;  %832 = vmatprep.subr.mxu1 %v280_v8 }
  0x50   : > { %761 = vmatpush3.msra.mxu0 %v280_v8  ;;  %848 = vmatpush3.msra.mxu1 %v280_v8 }
  0x51   : > { %762 = vmatprep.subr.mxu0 %v279_v9  ;;  %833 = vmatprep.subr.mxu1 %v279_v9 }
  0x52   : > { %763 = vmatpush3.msra.mxu0 %v279_v9  ;;  %849 = vmatpush3.msra.mxu1 %v279_v9 }
  0x53   : > { %764 = vmatprep.subr.mxu0 %v278_v10  ;;  %834 = vmatprep.subr.mxu1 %v278_v10 }
  0x54   : > { %765 = vmatpush3.msra.mxu0 %v278_v10  ;;  %850 = vmatpush3.msra.mxu1 %v278_v10 }
  0x55   : > { %766 = vmatprep.subr.mxu0 %v277_v11  ;;  %835 = vmatprep.subr.mxu1 %v277_v11 }
  0x56   : > { %767 = vmatpush3.msra.mxu0 %v277_v11  ;;  %851 = vmatpush3.msra.mxu1 %v277_v11 }
  0x57   : > { %768 = vmatprep.subr.mxu0 %v276_v12  ;;  %836 = vmatprep.subr.mxu1 %v276_v12 }
  0x58   : > { %769 = vmatpush3.msra.mxu0 %v276_v12  ;;  %852 = vmatpush3.msra.mxu1 %v276_v12 }
  0x59   : > { %770 = vmatprep.subr.mxu0 %v275_v13  ;;  %837 = vmatprep.subr.mxu1 %v275_v13 }
  0x5a   : > { %771 = vmatpush3.msra.mxu0 %v275_v13  ;;  %853 = vmatpush3.msra.mxu1 %v275_v13 }
  0x5b   : > { %772 = vmatprep.subr.mxu0 %v274_v14  ;;  %838 = vmatprep.subr.mxu1 %v274_v14 }
  0x5c   : > { %773 = vmatpush3.msra.mxu0 %v274_v14  ;;  %854 = vmatpush3.msra.mxu1 %v274_v14 }
  0x5d   : > { %774 = vmatprep.subr.mxu0 %v273_v15  ;;  %839 = vmatprep.subr.mxu1 %v273_v15 }
  0x5e   : > { %775 = vmatpush3.msra.mxu0 %v273_v15  ;;  %855 = vmatpush3.msra.mxu1 %v273_v15 }
  0x5f   : > { %776 = vmatprep.mubr.f32.mxu0 %v241_v16  ;;  %800 = vmatprep.mubr.f32.mxu1 %v257_v17 }
  0x60   : > { %777 = vmatmul.mubr.f32.vlgmr.msra.gmra.mxu0 %v242_v18  ;;  %801 = vmatmul.mubr.f32.vlgmr.msra.gmra.mxu1 %v258_v19 }
  0x61   : > { %779 = vmatprep.mubr.f32.mxu0 %v243_v20  ;;  %803 = vmatprep.mubr.f32.mxu1 %v259_v21 }
  0x64   : > { %780 = vmatmul.mubr.f32.gmra.mxu0 %v244_v22  ;;  %804 = vmatmul.mubr.f32.gmra.mxu1 %v260_v23 }
  0x65   : > { %782 = vmatprep.mubr.f32.mxu0 %v245_v24  ;;  %806 = vmatprep.mubr.f32.mxu1 %v261_v25 }
  0x68   : > { %783 = vmatmul.mubr.f32.gmra.mxu0 %v246_v26  ;;  %807 = vmatmul.mubr.f32.gmra.mxu1 %v262_v27 }
  0x69   : > { %785 = vmatprep.mubr.f32.mxu0 %v247_v28  ;;  %809 = vmatprep.mubr.f32.mxu1 %v263_v29 }
  0x6c   : > { %786 = vmatmul.mubr.f32.gmra.mxu0 %v248_v30  ;;  %810 = vmatmul.mubr.f32.gmra.mxu1 %v264_v31 }
  0x6d   : > { %788 = vmatprep.mubr.f32.mxu0 %v249_v32  ;;  %812 = vmatprep.mubr.f32.mxu1 %v265_v33 }
  0x70   : > { %789 = vmatmul.mubr.f32.gmra.mxu0 %v250_v34  ;;  %813 = vmatmul.mubr.f32.gmra.mxu1 %v266_v35 }
  0x71   : > { %791 = vmatprep.mubr.f32.mxu0 %v251_v36  ;;  %815 = vmatprep.mubr.f32.mxu1 %v267_v37 }
  0x74   : > { %792 = vmatmul.mubr.f32.gmra.mxu0 %v252_v38  ;;  %816 = vmatmul.mubr.f32.gmra.mxu1 %v268_v39 }
  0x75   : > { %794 = vmatprep.mubr.f32.mxu0 %v253_v40  ;;  %818 = vmatprep.mubr.f32.mxu1 %v269_v41 }
  0x78   : > { %795 = vmatmul.mubr.f32.gmra.mxu0 %v254_v42  ;;  %819 = vmatmul.mubr.f32.gmra.mxu1 %v270_v43 }
  0x79   : > { %797 = vmatprep.mubr.f32.mxu0 %v255_v44  ;;  %821 = vmatprep.mubr.f32.mxu1 %v271_v45 }
  0x7c   : > { %798 = vmatmul.mubr.f32.gmra.mxu0 %v256_v46  ;;  %822 = vmatmul.mubr.f32.gmra.mxu1 %v272_v47 }
 0x120   : > { %v778_v49 = vpop.f32.mrf.mxu0  ;;  %v802_v50 = vpop.f32.mrf.mxu1 }
 0x121   : > { %v368_v51 = vadd.f32 %v778_v49, %v1272_v48  ;;  %v448_v52 = vadd.f32 %v802_v50, %v1272_v48 }
 0x122   : > { %v362_v53 = vpop.f32.mrf.mxu0  ;;  %v442_v54 = vpop.f32.mrf.mxu1 }
 0x123   : > { %522 = vst [vmem:[%s1278_s24 + $0x8] sm:$0xff] %v368_v51  ;;  %538 = vst [vmem:[%s1278_s24 + $0x88] sm:$0xff] %v448_v52  ;;  %v363_v55 = vadd.f32 %v1272_v48, %v362_v53  ;;  %v443_v56 = vadd.f32 %v1272_v48, %v442_v54 }
 0x124   : > { %v781_v57 = vpop.f32.mrf.mxu0  ;;  %v805_v58 = vpop.f32.mrf.mxu1 }
 0x125   : > { %521 = vst [vmem:[%s1278_s24] sm:$0xff] %v363_v55  ;;  %537 = vst [vmem:[%s1278_s24 + $0x80] sm:$0xff] %v443_v56  ;;  %v378_v59 = vadd.f32 %v781_v57, %v1272_v48  ;;  %v458_v60 = vadd.f32 %v805_v58, %v1272_v48 }
 0x126   : > { %v372_v61 = vpop.f32.mrf.mxu0  ;;  %v452_v62 = vpop.f32.mrf.mxu1 }
 0x127   : > { %524 = vst [vmem:[%s1278_s24 + $0x18] sm:$0xff] %v378_v59  ;;  %540 = vst [vmem:[%s1278_s24 + $0x98] sm:$0xff] %v458_v60  ;;  %v373_v63 = vadd.f32 %v1272_v48, %v372_v61  ;;  %v453_v0 = vadd.f32 %v1272_v48, %v452_v62 }
 0x128   : > { %v784_v1 = vpop.f32.mrf.mxu0  ;;  %v808_v2 = vpop.f32.mrf.mxu1 }
 0x129   : > { %523 = vst [vmem:[%s1278_s24 + $0x10] sm:$0xff] %v373_v63  ;;  %539 = vst [vmem:[%s1278_s24 + $0x90] sm:$0xff] %v453_v0  ;;  %v388_v3 = vadd.f32 %v784_v1, %v1272_v48  ;;  %v468_v4 = vadd.f32 %v808_v2, %v1272_v48 }
 0x12a   : > { %v382_v5 = vpop.f32.mrf.mxu0  ;;  %v462_v6 = vpop.f32.mrf.mxu1 }
 0x12b   : > { %526 = vst [vmem:[%s1278_s24 + $0x28] sm:$0xff] %v388_v3  ;;  %542 = vst [vmem:[%s1278_s24 + $0xa8] sm:$0xff] %v468_v4  ;;  %v383_v7 = vadd.f32 %v1272_v48, %v382_v5  ;;  %v463_v8 = vadd.f32 %v1272_v48, %v462_v6 }
 0x12c   : > { %v787_v9 = vpop.f32.mrf.mxu0  ;;  %v811_v10 = vpop.f32.mrf.mxu1 }
 0x12d   : > { %525 = vst [vmem:[%s1278_s24 + $0x20] sm:$0xff] %v383_v7  ;;  %541 = vst [vmem:[%s1278_s24 + $0xa0] sm:$0xff] %v463_v8  ;;  %v398_v11 = vadd.f32 %v787_v9, %v1272_v48  ;;  %v478_v12 = vadd.f32 %v811_v10, %v1272_v48 }
 0x12e   : > { %v392_v13 = vpop.f32.mrf.mxu0  ;;  %v472_v14 = vpop.f32.mrf.mxu1 }
 0x12f   : > { %528 = vst [vmem:[%s1278_s24 + $0x38] sm:$0xff] %v398_v11  ;;  %544 = vst [vmem:[%s1278_s24 + $0xb8] sm:$0xff] %v478_v12  ;;  %v393_v15 = vadd.f32 %v1272_v48, %v392_v13  ;;  %v473_v16 = vadd.f32 %v1272_v48, %v472_v14 }
 0x130   : > { %v790_v17 = vpop.f32.mrf.mxu0  ;;  %v814_v18 = vpop.f32.mrf.mxu1 }
 0x131   : > { %527 = vst [vmem:[%s1278_s24 + $0x30] sm:$0xff] %v393_v15  ;;  %543 = vst [vmem:[%s1278_s24 + $0xb0] sm:$0xff] %v473_v16  ;;  %v408_v19 = vadd.f32 %v790_v17, %v1272_v48  ;;  %v488_v20 = vadd.f32 %v814_v18, %v1272_v48 }
 0x132   : > { %v402_v21 = vpop.f32.mrf.mxu0  ;;  %v482_v22 = vpop.f32.mrf.mxu1 }
 0x133   : > { %530 = vst [vmem:[%s1278_s24 + $0x48] sm:$0xff] %v408_v19  ;;  %546 = vst [vmem:[%s1278_s24 + $0xc8] sm:$0xff] %v488_v20  ;;  %v403_v23 = vadd.f32 %v1272_v48, %v402_v21  ;;  %v483_v24 = vadd.f32 %v1272_v48, %v482_v22 }
 0x134   : > { %v793_v25 = vpop.f32.mrf.mxu0  ;;  %v817_v26 = vpop.f32.mrf.mxu1 }
 0x135   : > { %529 = vst [vmem:[%s1278_s24 + $0x40] sm:$0xff] %v403_v23  ;;  %545 = vst [vmem:[%s1278_s24 + $0xc0] sm:$0xff] %v483_v24  ;;  %v418_v27 = vadd.f32 %v793_v25, %v1272_v48  ;;  %v498_v28 = vadd.f32 %v817_v26, %v1272_v48 }
 0x136   : > { %v412_v29 = vpop.f32.mrf.mxu0  ;;  %v492_v30 = vpop.f32.mrf.mxu1 }
 0x137   : > { %532 = vst [vmem:[%s1278_s24 + $0x58] sm:$0xff] %v418_v27  ;;  %548 = vst [vmem:[%s1278_s24 + $0xd8] sm:$0xff] %v498_v28  ;;  %v413_v31 = vadd.f32 %v1272_v48, %v412_v29  ;;  %v493_v32 = vadd.f32 %v1272_v48, %v492_v30 }
 0x138   : > { %v796_v33 = vpop.f32.mrf.mxu0  ;;  %v820_v34 = vpop.f32.mrf.mxu1 }
 0x139   : > { %531 = vst [vmem:[%s1278_s24 + $0x50] sm:$0xff] %v413_v31  ;;  %547 = vst [vmem:[%s1278_s24 + $0xd0] sm:$0xff] %v493_v32  ;;  %v428_v35 = vadd.f32 %v796_v33, %v1272_v48  ;;  %v508_v36 = vadd.f32 %v820_v34, %v1272_v48 }
 0x13a   : > { %v422_v37 = vpop.f32.mrf.mxu0  ;;  %v502_v38 = vpop.f32.mrf.mxu1 }
 0x13b   : > { %534 = vst [vmem:[%s1278_s24 + $0x68] sm:$0xff] %v428_v35  ;;  %550 = vst [vmem:[%s1278_s24 + $0xe8] sm:$0xff] %v508_v36  ;;  %v423_v39 = vadd.f32 %v1272_v48, %v422_v37  ;;  %v503_v40 = vadd.f32 %v1272_v48, %v502_v38 }
 0x13c   : > { %v799_v41 = vpop.f32.mrf.mxu0  ;;  %v823_v42 = vpop.f32.mrf.mxu1 }
 0x13d   : > { %533 = vst [vmem:[%s1278_s24 + $0x60] sm:$0xff] %v423_v39  ;;  %549 = vst [vmem:[%s1278_s24 + $0xe0] sm:$0xff] %v503_v40  ;;  %v438_v43 = vadd.f32 %v799_v41, %v1272_v48  ;;  %v518_v44 = vadd.f32 %v823_v42, %v1272_v48 }
 0x13e   : > { %v432_v45 = vpop.f32.mrf.mxu0  ;;  %v512_v46 = vpop.f32.mrf.mxu1 }
 0x13f   : > { %536 = vst [vmem:[%s1278_s24 + $0x78] sm:$0xff] %v438_v43  ;;  %552 = vst [vmem:[%s1278_s24 + $0xf8] sm:$0xff] %v518_v44  ;;  %v433_v47 = vadd.f32 %v1272_v48, %v432_v45  ;;  %v513_v49 = vadd.f32 %v1272_v48, %v512_v46 }
 0x141   : > { %535 = vst [vmem:[%s1278_s24 + $0x70] sm:$0xff] %v433_v47  ;;  %551 = vst [vmem:[%s1278_s24 + $0xf0] sm:$0xff] %v513_v49 }
 0x142   : > { %1000 = shalt.err (!%p997_p5)
}
 0x143   : > { %s1001_s18 = scalar_lea.hbm %s1341_s21, 4096  ;;  %s1005_s27 = scalar_lea.hbm %s1400_s3, 8192 }
 0x144   : > { %p1002_p7 = scmp.ne.s32.totalorder %s1341_s21, %s1001_s18  ;;  %p1006_p9 = scmp.lt.s32.totalorder %s1341_s21, %s1400_s3 }
 0x145   : > { %p1007_p11 = scmp.lt.s32.totalorder %s1005_s27, %s1001_s18 }
 0x146   : > { %p1003_p4 = pnand %p1002_p7, %p1190_p13 }
 0x147   : > { %p1008_p10 = por %p1007_p11, %p1006_p9 }
 0x148   : > { %p1004_p6 = pneg %p1003_p4 }
 0x14a   : > { %p1009_p1 = pnand %p1008_p10, %p1004_p6 }
 0x14c   : > { %1012 = shalt.err (!%p1009_p1)
}
 0x14d   : > { %s1078_s24 = smov 128   ;;  %s1079_s30 = smov 8  }
 0x14e   : > { %862 = dma.vmem_to_hbm [thread:$0]  (%p1190_p13), %s1343_s29, 4096, %s1341_s21, %s554_s15, %s1078_s24, %s1078_s24, %s1079_s30  }
 0x14f PF: > { %s583_s5 = sand.u32 1, %s1051_s12   ;;  %p1416_p8 = scmp.ne.s32.totalorder %s1407_s23, 0 }
 0x150   : > { %p1417_p12 = scmp.ge.s32.totalorder %s1071_s17, 2  ;;  %s584_s6 = scalar_lea.sflag [#allocation4], %s583_s5 }
 0x152   : > { %p873_p0 = pnand %p1417_p12, %p1416_p8 }
 0x154   : > { %p874_p2 = pneg %p873_p0 }
 0x156   : > { %1046 = dma.done.wait (%p874_p2), %s584_s6, 4096  }
 0x157   : > { %1048 = vsyncadd (%p874_p2), %s584_s6, 4294963200  ;;  %s20_s17 = sadd.s32 1, %s1071_s17   ;;  %s1418_s12 = smov %s1055_s13 }
 0x158   : > { %p17_p3 = scmp.ge.s32.totalorder %s20_s17, 4   ;;  %s1419_s13 = smov %s1059_s14 }
 0x159   : > { %s1420_s14 = smov %s1199_s19  ;;  %s1421_s15 = smov %s1067_s16 }
 0x15a   : > { %s1422_s16 = smov %s1424_s28  ;;  %19 = sbr.rel (!%p17_p3) target bundleno = 7 (0x7), region = 85 }
 0x15f   :  { %589 = vsyncpa [#allocation3], 1 }
 0x160   :  { %591 = vsyncpa [#allocation3 + $0x1], 1 }
 0x161   :  { %592 = vsyncpa [#allocation6], 1 }
 0x162   :  { %593 = vsyncpa [#allocation4], 1 }
 0x163   :  { %595 = vsyncpa [#allocation4 + $0x1], 1 }

</bundles_post_ra>
